<compile_context>
chip_gen: v5e
topology: v5e:2x2
jax: 0.10.0
libtpu: 0.0.40
codegen_flags: <defaults>
</compile_context>

<pallas_src>
import functools

import jax
import jax.numpy as jnp
import numpy as np
from jax import lax
from jax.experimental import pallas as pl
from jax.experimental.pallas import tpu as pltpu


def _round_up(x, m):
    return ((x + m - 1) // m) * m


# ----------------------------------------------------------------------------
# Tied path: logits = x @ W_emb^T + bias
# ----------------------------------------------------------------------------
def _tied_kernel(x_ref, w_ref, b_ref, o_ref, acc_ref):
    # grid = (Mp//tm, Vp//tn, Hp//tk); reduction axis k is innermost.
    @pl.when(pl.program_id(2) == 0)
    def _():
        acc_ref[...] = jnp.zeros_like(acc_ref)

    # x: [tm, tk], w: [tn, tk] (native [V, H] layout) -> contract last dims on the MXU.
    acc_ref[...] += lax.dot_general(
        x_ref[...], w_ref[...],
        dimension_numbers=(((1,), (1,)), ((), ())),
        preferred_element_type=jnp.float32)

    @pl.when(pl.program_id(2) == pl.num_programs(2) - 1)
    def _():
        o_ref[...] = (acc_ref[...] + b_ref[...]).astype(o_ref.dtype)


@functools.partial(jax.jit, static_argnames=("tm", "tn", "tk", "out_dtype"))
def mlm_tied(hidden_states, embedding_weights, bias, *,
             tm=256, tn=1024, tk=512, out_dtype=jnp.float32):
    B, S, H = hidden_states.shape
    V, H2 = embedding_weights.shape
    assert H == H2
    M = B * S

    tm = min(tm, _round_up(M, 8))
    tn = min(tn, _round_up(V, 128))
    tk = min(tk, _round_up(H, 128))
    Mp, Vp, Hp = _round_up(M, tm), _round_up(V, tn), _round_up(H, tk)

    x2d = hidden_states.reshape(M, H)
    if (Mp, Hp) != (M, H):
        x2d = jnp.pad(x2d, ((0, Mp - M), (0, Hp - H)))
    w = embedding_weights
    if (Vp, Hp) != (V, H):
        w = jnp.pad(w, ((0, Vp - V), (0, Hp - H)))
    b2d = bias.reshape(1, V)
    if Vp != V:
        b2d = jnp.pad(b2d, ((0, 0), (0, Vp - V)))

    # bf16 MXU inputs, f32 accumulation: halves weight / activation DMA bytes; the
    # weight table is re-read Mp/tm times across the row axis, so the one-time cast
    # (fused with the pad by XLA) pays for itself.
    x2d = x2d.astype(jnp.bfloat16)
    w = w.astype(jnp.bfloat16)

    out = pl.pallas_call(
        _tied_kernel,
        out_shape=jax.ShapeDtypeStruct((Mp, Vp), out_dtype),
        grid_spec=pltpu.PrefetchScalarGridSpec(
            num_scalar_prefetch=0,
            grid=(Mp // tm, Vp // tn, Hp // tk),
            in_specs=[
                pl.BlockSpec((tm, tk), lambda i, j, k: (i, k)),
                pl.BlockSpec((tn, tk), lambda i, j, k: (j, k)),   # native [V, H] layout
                pl.BlockSpec((1, tn), lambda i, j, k: (0, j)),
            ],
            out_specs=pl.BlockSpec((tm, tn), lambda i, j, k: (i, j)),
            scratch_shapes=[pltpu.VMEM((tm, tn), jnp.float32)],
        ),
        compiler_params=pltpu.CompilerParams(
            dimension_semantics=("parallel", "parallel", "arbitrary")
        ),
    )(x2d, w, b2d)
    return out[:M, :V].reshape(B, S, V)


# ----------------------------------------------------------------------------
# Untied path: logits = decoder(LayerNorm(GELU(dense(x)))) + bias
# ----------------------------------------------------------------------------
_A1, _A2, _A3, _A4, _A5 = 0.254829592, -0.284496736, 1.421413741, -1.453152027, 1.061405429
_P = 0.3275911
_INV_SQRT2 = 0.7071067811865475


def _erf(x):
    # Abramowitz & Stegun 7.1.26 rational approximation (max abs err ~1.5e-7).
    # Divide replaced by approx EUP reciprocal (otherwise-idle bundle slot).
    s = jnp.sign(x)
    ax = jnp.abs(x)
    t = pl.reciprocal(1.0 + _P * ax, approx=True)
    poly = ((((_A5 * t + _A4) * t + _A3) * t + _A2) * t + _A1) * t
    return s * (1.0 - poly * jnp.exp(-ax * ax))


def _gelu_exact(x):
    # nn.GELU() default = exact (erf-based) GELU.
    return 0.5 * x * (1.0 + _erf(x * _INV_SQRT2))


def _untied_kernel(x_ref, wd_ref, bd_ref, g_ref, be_ref, wdec_ref, bias_ref,
                   o_ref, hn_ref):
    # grid = (Mp//tm, Vp//tn); vocab axis j is innermost, so hn_ref (VMEM scratch)
    # persists across j and stage-1 (dense + GELU + LN) runs once per row tile.
    @pl.when(pl.program_id(1) == 0)
    def _():
        x = x_ref[...]                                            # [tm, H] bf16
        # dense: y = x @ Wd^T + b  (Wd in torch [H_out, H_in]; contract last dims)
        h = lax.dot_general(x, wd_ref[...],
                            dimension_numbers=(((1,), (1,)), ((), ())),
                            preferred_element_type=jnp.float32) + bd_ref[...]
        h = _gelu_exact(h)                                        # f32 VPU/EUP
        # LayerNorm over H, eps=1e-12, biased variance (PyTorch), f32.
        mean = jnp.mean(h, axis=-1, keepdims=True)
        var = jnp.mean((h - mean) * (h - mean), axis=-1, keepdims=True)
        hn = (h - mean) * lax.rsqrt(var + 1e-12)
        hn = hn * g_ref[...] + be_ref[...]
        hn_ref[...] = hn.astype(hn_ref.dtype)                     # written once (bf16)

    # decoder: logits = hn @ Wdec^T + bias   (Wdec block [tn, H], native layout)
    logits = lax.dot_general(hn_ref[...], wdec_ref[...],
                             dimension_numbers=(((1,), (1,)), ((), ())),
                             preferred_element_type=jnp.float32) + bias_ref[...]
    o_ref[...] = logits.astype(o_ref.dtype)


@functools.partial(jax.jit, static_argnames=("tm", "tn", "out_dtype"))
def mlm_untied(hidden_states, dense_w, dense_b, ln_gamma, ln_beta, dec_w, bias,
               *, tm=256, tn=512, out_dtype=jnp.float32):
    B, S, H = hidden_states.shape
    V, H2 = dec_w.shape
    assert H == H2 and dense_w.shape == (H, H)
    M = B * S

    tm = min(tm, _round_up(M, 8))
    tn = min(tn, _round_up(V, 128))
    Mp, Vp = _round_up(M, tm), _round_up(V, tn)

    x2d = hidden_states.reshape(M, H)
    if Mp != M:
        x2d = jnp.pad(x2d, ((0, Mp - M), (0, 0)))
    wdec = dec_w
    b2d = bias.reshape(1, V)
    if Vp != V:
        wdec = jnp.pad(wdec, ((0, Vp - V), (0, 0)))
        b2d = jnp.pad(b2d, ((0, 0), (0, Vp - V)))

    # bf16 MXU inputs (f32 accumulation); GELU/LN stays f32 inside the kernel.
    x2d = x2d.astype(jnp.bfloat16)
    wd = dense_w.astype(jnp.bfloat16)     # resident in VMEM; bf16 halves its footprint
    wdec = wdec.astype(jnp.bfloat16)
    # TODO(synk): for very large H (>=4k) on v7x (64 MiB VMEM), tile the dense
    # weight's K dimension instead of keeping the full (H, H) block resident.

    bd2d = dense_b.reshape(1, H)
    g2d = ln_gamma.reshape(1, H)
    be2d = ln_beta.reshape(1, H)

    out = pl.pallas_call(
        _untied_kernel,
        out_shape=jax.ShapeDtypeStruct((Mp, Vp), out_dtype),
        grid_spec=pltpu.PrefetchScalarGridSpec(
            num_scalar_prefetch=0,
            grid=(Mp // tm, Vp // tn),
            in_specs=[
                pl.BlockSpec((tm, H), lambda i, j: (i, 0)),
                pl.BlockSpec((H, H), lambda i, j: (0, 0)),
                pl.BlockSpec((1, H), lambda i, j: (0, 0)),
                pl.BlockSpec((1, H), lambda i, j: (0, 0)),
                pl.BlockSpec((1, H), lambda i, j: (0, 0)),
                pl.BlockSpec((tn, H), lambda i, j: (j, 0)),       # native [V, H] layout
                pl.BlockSpec((1, tn), lambda i, j: (0, j)),
            ],
            out_specs=pl.BlockSpec((tm, tn), lambda i, j: (i, j)),
            scratch_shapes=[pltpu.VMEM((tm, H), jnp.bfloat16)],
        ),
        compiler_params=pltpu.CompilerParams(
            # j carries the per-row-tile hn scratch across steps -> "arbitrary".
            dimension_semantics=("parallel", "arbitrary")
        ),
    )(x2d, wd, bd2d, g2d, be2d, wdec, b2d)
    return out[:M, :V].reshape(B, S, V)


# ----------------------------------------------------------------------------
# Deterministic parameter init (mirrors MlmLayer.__init__ shapes)
# ----------------------------------------------------------------------------
def trunc_normal(key, shape, std=0.02):
    # truncated normal in [-2*std, 2*std], like truncated_normal_(std=0.02, a=-0.04, b=0.04)
    return jax.random.truncated_normal(key, -2.0, 2.0, shape, jnp.float32) * std


# ----------------------------------------------------------------------------
# Pure-JAX references (mirroring the kernel's bf16 MXU inputs / f32 accumulation)
# ----------------------------------------------------------------------------
def _ref_tied(hidden, emb_w, bias):
    B, S, H = hidden.shape
    xb = hidden.reshape(B * S, H).astype(jnp.bfloat16)
    wb = emb_w.astype(jnp.bfloat16)
    out = jnp.dot(xb, wb.T, preferred_element_type=jnp.float32) + bias
    return out.reshape(B, S, -1)


def _ref_untied(hidden, dense_w, dense_b, g, b, dec_w, bias):
    B, S, H = hidden.shape
    x = hidden.reshape(B * S, H).astype(jnp.bfloat16)
    h = jnp.dot(x, dense_w.astype(jnp.bfloat16).T,
                preferred_element_type=jnp.float32) + dense_b
    h = 0.5 * h * (1.0 + jax.scipy.special.erf(h * _INV_SQRT2))
    mu = jnp.mean(h, axis=-1, keepdims=True)
    var = jnp.mean((h - mu) ** 2, axis=-1, keepdims=True)
    hn = (h - mu) / jnp.sqrt(var + 1e-12) * g + b
    out = jnp.dot(hn.astype(jnp.bfloat16), dec_w.astype(jnp.bfloat16).T,
                  preferred_element_type=jnp.float32) + bias
    return out.reshape(B, S, -1)


if __name__ == "__main__":
    key = jax.random.PRNGKey(0)
    (k_x, k_emb, k_b, k_wd, k_wdec, k_bu,
     k_x2, k_emb2, k_b2, k_wd2, k_wdec2, k_bu2) = jax.random.split(key, 12)

    # ---- case 1: divisible shapes, small tiles -> exercises multi-step grids,
    #      the k-accumulator, and the untied per-row-tile hn scratch across j ----
    B, S, H, V = 2, 64, 256, 512
    hidden = jax.random.normal(k_x, (B, S, H), jnp.float32)
    emb_w = jax.random.normal(k_emb, (V, H), jnp.float32) * 0.02
    bias = jax.random.normal(k_b, (V,), jnp.float32) * 0.01

    out = jax.block_until_ready(mlm_tied(hidden, emb_w, bias, tm=64, tn=128, tk=128))
    np.testing.assert_allclose(np.asarray(out), np.asarray(_ref_tied(hidden, emb_w, bias)),
                               rtol=1e-2, atol=1e-2)

    dense_w = trunc_normal(k_wd, (H, H))
    dense_b = jnp.zeros((H,), jnp.float32)
    gamma = jnp.ones((H,), jnp.float32)
    beta = jnp.zeros((H,), jnp.float32)
    dec_w = trunc_normal(k_wdec, (V, H))
    bias_u = jax.random.normal(k_bu, (V,), jnp.float32) * 0.01

    out = jax.block_until_ready(
        mlm_untied(hidden, dense_w, dense_b, gamma, beta, dec_w, bias_u, tm=64, tn=128))
    np.testing.assert_allclose(
        np.asarray(out),
        np.asarray(_ref_untied(hidden, dense_w, dense_b, gamma, beta, dec_w, bias_u)),
        rtol=1e-2, atol=1e-2)

    # ---- case 2: non-divisible shapes with default tiles -> exercises padding ----
    B, S, H, V = 2, 50, 96, 200
    hidden = jax.random.normal(k_x2, (B, S, H), jnp.float32)
    emb_w = jax.random.normal(k_emb2, (V, H), jnp.float32) * 0.02
    bias = jax.random.normal(k_b2, (V,), jnp.float32) * 0.01

    out = jax.block_until_ready(mlm_tied(hidden, emb_w, bias))
    np.testing.assert_allclose(np.asarray(out), np.asarray(_ref_tied(hidden, emb_w, bias)),
                               rtol=1e-2, atol=1e-2)

    dense_w = trunc_normal(k_wd2, (H, H))
    dense_b = jnp.zeros((H,), jnp.float32)
    gamma = jnp.ones((H,), jnp.float32)
    beta = jnp.zeros((H,), jnp.float32)
    dec_w = trunc_normal(k_wdec2, (V, H))
    bias_u = jax.random.normal(k_bu2, (V,), jnp.float32) * 0.01

    out = jax.block_until_ready(
        mlm_untied(hidden, dense_w, dense_b, gamma, beta, dec_w, bias_u))
    np.testing.assert_allclose(
        np.asarray(out),
        np.asarray(_ref_untied(hidden, dense_w, dense_b, gamma, beta, dec_w, bias_u)),
        rtol=1e-2, atol=1e-2)

    print("KERNEL_OK")
</pallas_src>

<mosaic_0001>
module attributes {stable_mosaic.version = 11 : i64} {
  func.func @_tied_kernel(%arg0: i32, %arg1: i32, %arg2: i32, %arg3: memref<64x128xbf16, #tpu.memory_space<vmem>>, %arg4: memref<128x128xbf16, #tpu.memory_space<vmem>>, %arg5: memref<1x128xf32, #tpu.memory_space<vmem>>, %arg6: memref<64x128xf32, #tpu.memory_space<vmem>>, %arg7: memref<64x128xf32, #tpu.memory_space<vmem>>) attributes {dimension_semantics = [#tpu.dimension_semantics<parallel>, #tpu.dimension_semantics<parallel>, #tpu.dimension_semantics<arbitrary>], iteration_bounds = array<i64: 2, 4, 2>, scalar_prefetch = 0 : i64, scratch_operands = 1 : i64, tpu.core_type = #tpu.core_type<tc>, window_params = [{transform_indices = @transform_0, window_bounds = array<i64: 64, 128>}, {transform_indices = @transform_1, window_bounds = array<i64: 128, 128>}, {transform_indices = @transform_2, window_bounds = array<i64: 1, 128>}, {transform_indices = @transform_3, window_bounds = array<i64: 64, 128>}]} {
    %c0_i32 = arith.constant 0 : i32
    %0 = arith.cmpi eq, %arg2, %c0_i32 : i32
    %1 = arith.extui %0 : i1 to i32
    %c0_i32_0 = arith.constant 0 : i32
    %2 = arith.cmpi ne, %1, %c0_i32_0 : i32
    scf.if %2 {
      %cst_9 = arith.constant 0.000000e+00 : f32
      %12 = vector.broadcast %cst_9 : f32 to vector<64x128xf32>
      %c0_10 = arith.constant 0 : index
      %c0_11 = arith.constant 0 : index
      %13 = vector.load %arg7[%c0_10, %c0_11] : memref<64x128xf32, #tpu.memory_space<vmem>>, vector<64x128xf32>
      tpu.vector_store %arg7[%c0_10, %c0_11], %12 {strides = array<i32>} : memref<64x128xf32, #tpu.memory_space<vmem>>, vector<64x128xf32>,
    } else {
    }
    %c0 = arith.constant 0 : index
    %c0_1 = arith.constant 0 : index
    %3 = vector.load %arg7[%c0, %c0_1] : memref<64x128xf32, #tpu.memory_space<vmem>>, vector<64x128xf32>
    %c0_2 = arith.constant 0 : index
    %c0_3 = arith.constant 0 : index
    %4 = vector.load %arg3[%c0_2, %c0_3] : memref<64x128xbf16, #tpu.memory_space<vmem>>, vector<64x128xbf16>
    %c0_4 = arith.constant 0 : index
    %c0_5 = arith.constant 0 : index
    %5 = vector.load %arg4[%c0_4, %c0_5] : memref<128x128xbf16, #tpu.memory_space<vmem>>, vector<128x128xbf16>
    %cst = arith.constant dense<0.000000e+00> : vector<64x128xf32>
    %6 = tpu.matmul %4, %5, %cst {dimension_numbers = #tpu.dot_dimension_numbers<[1], [1], [0], [0], [0, 0, 1, 0], [], []>} : vector<64x128xbf16>, vector<128x128xbf16>, vector<64x128xf32> -> vector<64x128xf32>
    %7 = arith.addf %3, %6 : vector<64x128xf32>
    %c0_6 = arith.constant 0 : index
    %c0_7 = arith.constant 0 : index
    %8 = vector.load %arg7[%c0_6, %c0_7] : memref<64x128xf32, #tpu.memory_space<vmem>>, vector<64x128xf32>
    tpu.vector_store %arg7[%c0_6, %c0_7], %7 {strides = array<i32>} : memref<64x128xf32, #tpu.memory_space<vmem>>, vector<64x128xf32>,
    %c1_i32 = arith.constant 1 : i32
    %9 = arith.cmpi eq, %arg2, %c1_i32 : i32
    %10 = arith.extui %9 : i1 to i32
    %c0_i32_8 = arith.constant 0 : i32
    %11 = arith.cmpi ne, %10, %c0_i32_8 : i32
    scf.if %11 {
      %c0_9 = arith.constant 0 : index
      %c0_10 = arith.constant 0 : index
      %12 = vector.load %arg7[%c0_9, %c0_10] : memref<64x128xf32, #tpu.memory_space<vmem>>, vector<64x128xf32>
      %c0_11 = arith.constant 0 : index
      %c0_12 = arith.constant 0 : index
      %13 = vector.load %arg5[%c0_11, %c0_12] : memref<1x128xf32, #tpu.memory_space<vmem>>, vector<1x128xf32>
      %14 = vector.broadcast %13 : vector<1x128xf32> to vector<64x128xf32>
      %15 = arith.addf %12, %14 : vector<64x128xf32>
      %c0_13 = arith.constant 0 : index
      %c0_14 = arith.constant 0 : index
      %16 = vector.load %arg6[%c0_13, %c0_14] : memref<64x128xf32, #tpu.memory_space<vmem>>, vector<64x128xf32>
      tpu.vector_store %arg6[%c0_13, %c0_14], %15 {strides = array<i32>} : memref<64x128xf32, #tpu.memory_space<vmem>>, vector<64x128xf32>,
    } else {
    }
    return
  }
  func.func @transform_0(%arg0: i32, %arg1: i32, %arg2: i32) -> (i32, i32) {
    %c0_i32 = arith.constant 0 : i32
    return %arg0, %arg2 : i32, i32
  }
  func.func @transform_1(%arg0: i32, %arg1: i32, %arg2: i32) -> (i32, i32) {
    %c0_i32 = arith.constant 0 : i32
    return %arg1, %arg2 : i32, i32
  }
  func.func @transform_2(%arg0: i32, %arg1: i32, %arg2: i32) -> (i32, i32) {
    %c0_i32 = arith.constant 0 : i32
    %c0_i32_0 = arith.constant 0 : i32
    return %c0_i32, %arg1 : i32, i32
  }
  func.func @transform_3(%arg0: i32, %arg1: i32, %arg2: i32) -> (i32, i32) {
    %c0_i32 = arith.constant 0 : i32
    return %arg0, %arg1 : i32, i32
  }
}

</mosaic_0001>

<bundles_post_ra>
// kernel: mlm_tied.1
= control target key start
LH: loop header
LB: loop body
LE: loop exit
PB: predicated region body
PF: predicated region fallthrough
CT: control target
= control target key end

     0   :  { %s1426_s0 = inlined_call_operand.vmem [shape: bf16[128,256], index: 0, kind: input, shape index: {}]   ;;  %s1427_s1 = inlined_call_operand.vmem [shape: bf16[512,256], index: 1, kind: input, shape index: {}]   ;;  %s1428_s2 = inlined_call_operand.vmem [shape: f32[1,512], index: 2, kind: input, shape index: {}]   ;;  %s1429_s3 = inlined_call_operand.hbm [shape: f32[128,512], index: 3, kind: output, shape index: {}]  }
   0x1   :  { %1434 = sst [smem:[#allocation13_spill]] %s1426_s0 }
   0x2   :  { %1435 = sst [smem:[#allocation14_spill]] %s1427_s1 }
   0x3   :  { %1436 = sst [smem:[#allocation15_spill]] %s1428_s2 }
   0x4   :  { %1437 = sst [smem:[#allocation16_spill]] %s1429_s3 }
   0x5   :  { %8 = vsyncpa [#allocation6], 0 }
   0x6   :  { %10 = vsyncpa [#allocation6 + $0x1], 0  ;;  %s1143_s12 = smov 0   ;;  %s1145_s13 = smov 0  }
   0x7   :  { %s1147_s14 = smov 0   ;;  %s1149_s15 = smov 0  }
   0x8   :  { %s1151_s16 = smov 0   ;;  %s1153_s17 = smov 0  }
   0x9   :  { %s1155_s18 = smov 0   ;;  %s1157_s19 = smov 0  }
   0xa   :  { %s1159_s20 = smov 0   ;;  %s1161_s21 = smov 0  }
   0xb   :  { %s1163_s22 = smov 0   ;;  %s1165_s23 = smov 0  }
   0xc   :  { %s1167_s24 = smov 0   ;;  %s1169_s25 = smov 0  }
   0xd LB: > { %1438 = sst [smem:[#allocation8_spill]] %s1093_s19  ;;  %s28_s28 = sadd.s32 1, %s1105_s22  ;;  %s1117_s25 = sphi %s1169_s25, %s16_s25   ;;  %s1113_s24 = sphi %s1167_s24, %s1473_s24   ;;  %s1109_s23 = sphi %s1165_s23, %s1472_s23   ;;  %s1105_s22 = sphi %s1163_s22, %s1471_s22   ;;  %s1101_s21 = sphi %s1161_s21, %s1470_s21   ;;  %s1097_s20 = sphi %s1159_s20, %s1469_s20   ;;  %s1093_s19 = sphi %s1157_s19, %s1468_s19   ;;  %s1089_s18 = sphi %s1155_s18, %s1467_s18   ;;  %s1085_s17 = sphi %s1153_s17, %s1466_s17   ;;  %s1081_s16 = sphi %s1151_s16, %s1465_s16   ;;  %s1077_s15 = sphi %s1149_s15, %s1464_s15   ;;  %s1073_s14 = sphi %s1147_s14, %s1463_s14   ;;  %s1069_s13 = sphi %s1145_s13, %s1462_s13   ;;  %s1065_s12 = sphi %s1143_s12, %s1461_s12  }
   0xe   : > { %1439 = sst [smem:[#allocation9_spill]] %s1101_s21  ;;  %s31_s29 = sadd.s32 1, %s1109_s23 }
   0xf   : > { %p29_p0 = scmp.ge.s32.totalorder %s28_s28, 2  ;;  %s35_s30 = sadd.s32 1, %s1113_s24 }
  0x10   : > { %s44_s4 = sadd.s32 1, %s1089_s18  ;;  %p51_p1 = scmp.ne.s32.totalorder %s1089_s18, %s1085_s17 }
  0x11   : > { %s1475_s28 = smov (%p29_p0, %s28_s28), 0  ;;  %s1477_s29 = smov (!%p29_p0, %s31_s29), %s1109_s23 }
  0x12   : > { %1440 = sst [smem:[#allocation10_spill]] %s1475_s28  ;;  %s40_s5 = ssub.s32 %s1105_s22, %s1475_s28 }
  0x13   : > { %p52_p2 = scmp.eq.s32.totalorder %s1117_s25, 0  ;;  %p33_p3 = scmp.ge.s32.totalorder %s1477_s29, 4 }
  0x14   : > { %s72_s6 = sadd.s32 1, %s1081_s16  ;;  %p79_p5 = scmp.ne.s32.totalorder %s1081_s16, %s1077_s15 }
  0x15   : > { %p1228_p4 = por %p52_p2, %p51_p1  ;;  %s1479_s29 = smov (%p33_p3, %s1477_s29), 0 }
  0x16   : > { %1442 = sst [smem:[#allocation11_spill]] %s1479_s29  ;;  %s1481_s30 = smov (!%p33_p3, %s35_s30), %s1113_s24 }
  0x17   : > { %s67_s8 = ssub.s32 %s1109_s23, %s1479_s29  ;;  %p1239_p6 = por %p79_p5, %p52_p2 }
  0x18   : > { %p37_p7 = scmp.ge.s32.totalorder %s1481_s30, 2  ;;  %s69_s10 = sor.u32 %s67_s8, %s40_s5 }
  0x19   : > { %p70_p8 = scmp.eq.s32.totalorder %s69_s10, 0  ;;  %s126_s11 = sadd.s32 1, %s1073_s14 }
  0x1a   : > { %s1483_s30 = smov (%p37_p7, %s1481_s30), 0  ;;  %p136_p9 = scmp.ne.s32.totalorder %s1073_s14, %s1069_s13 }
  0x1b   : > { %1444 = sst [smem:[#allocation12_spill]] %s1483_s30  ;;  %s39_s26 = ssub.s32 %s1113_s24, %s1483_s30 }
  0x1c   : > { %s1247_s27 = scalar_select %p70_p8, %s1081_s16, %s72_s6  }
  0x1d   : > { %s41_s28 = sor.u32 %s40_s5, %s39_s26  ;;  %s123_s29 = sor.u32 %s67_s8, %s39_s26 }
  0x1e   : > { %p42_p10 = scmp.eq.s32.totalorder %s41_s28, 0  ;;  %p124_p11 = scmp.eq.s32.totalorder %s123_s29, 0 }
  0x1f   : > { %s1445_s3 = sadd.s32 4294967295, %s1117_s25   ;;  %p142_p13 = scmp.ne.s32.totalorder %s1069_s13, %s1065_s12 }
  0x20   : > { %p137_p12 = scmp.eq.s32.totalorder %s1445_s3, 15  ;;  %s1447_s2 = sadd.s32 4294967294, %s1117_s25  }
  0x21   : > { %s1258_s21 = scalar_select %p42_p10, %s1089_s18, %s44_s4  }
  0x22   : > { %s1261_s19 = scalar_select %p124_p11, %s1073_s14, %s126_s11  }
  0x23   : > { %p1263_p0 = por %p137_p12, %p136_p9  ;;  %p143_p1 = scmp.eq.s32.totalorder %s1447_s2, 15 }
  0x24   : > { %p743_p3 = scmp.ge.s32.totalorder %s1117_s25, 16 }
  0x25   : > { %p1269_p2 = por %p143_p1, %p142_p13 }
  0x26   : > { %159 = sbr.rel (%p743_p3) target bundleno = 87 (0x57), region = 16 }
  0x2b   : > { %162 = sbr.rel (!%p1228_p4) target bundleno = 61 (0x3d), region = 20  ;;  %s164_s3 = sand.u32 (%p1228_p4), 1, %s1089_s18  }
  0x2c   : > { %s812_s26 = sshll.u32 (%p1228_p4), %s1113_s24, 4  ;;  %s744_s28 = sshll.u32 (%p1228_p4), %s164_s3, 5 }
  0x2d   : > { %s169_s29 = sadd.s32 (%p1228_p4), %s1105_s22, %s812_s26  ;;  %s1449_s0 = sld [smem:[#allocation13_spill]] (%p1228_p4) }
  0x2e   : > { %s747_s4 = sshll.u32 (%p1228_p4), %s169_s29, 2  ;;  %s166_s11 = scalar_lea.vmem (%p1228_p4), [#allocation3], %s744_s28 }
  0x33   : > { %s171_s8 = scalar_lea.vmem %s1449_s0, %s747_s4 }
  0x34   : > { %v188_v0 = vld [vmem:[%s171_s8] sm:$0xf]  ;;  %v190_v1 = vld [vmem:[%s171_s8 + $0x8] sm:$0xf]  ;;  %v192_v2 = vld [vmem:[%s171_s8 + $0x10] sm:$0xf] }
  0x35   : > { %189 = vst [vmem:[%s166_s11] sm:$0xf] %v188_v0  ;;  %v194_v3 = vld [vmem:[%s171_s8 + $0x18] sm:$0xf]  ;;  %v196_v4 = vld [vmem:[%s171_s8 + $0x20] sm:$0xf] }
  0x36   : > { %191 = vst [vmem:[%s166_s11 + $0x4] sm:$0xf] %v190_v1  ;;  %v198_v5 = vld [vmem:[%s171_s8 + $0x28] sm:$0xf]  ;;  %v200_v6 = vld [vmem:[%s171_s8 + $0x30] sm:$0xf] }
  0x37   : > { %193 = vst [vmem:[%s166_s11 + $0x8] sm:$0xf] %v192_v2  ;;  %v202_v7 = vld [vmem:[%s171_s8 + $0x38] sm:$0xf] }
  0x38   : > { %195 = vst [vmem:[%s166_s11 + $0xc] sm:$0xf] %v194_v3 }
  0x39   : > { %197 = vst [vmem:[%s166_s11 + $0x10] sm:$0xf] %v196_v4 }
  0x3a   : > { %199 = vst [vmem:[%s166_s11 + $0x14] sm:$0xf] %v198_v5 }
  0x3b   : > { %201 = vst [vmem:[%s166_s11 + $0x18] sm:$0xf] %v200_v6 }
  0x3c   : > { %203 = vst [vmem:[%s166_s11 + $0x1c] sm:$0xf] %v202_v7 }
  0x3d PF: > { %243 = sbr.rel (!%p1239_p6) target bundleno = 87 (0x57), region = 61  ;;  %s245_s7 = sand.u32 (%p1239_p6), 1, %s1081_s16  }
  0x3e   : > { %s813_s3 = sshll.u32 (%p1239_p6), %s1109_s23, 5  ;;  %s748_s26 = sshll.u32 (%p1239_p6), %s245_s7, 6 }
  0x3f   : > { %s250_s28 = sadd.s32 (%p1239_p6), %s1105_s22, %s813_s3  ;;  %s1450_s1 = sld [smem:[#allocation14_spill]] (%p1239_p6) }
  0x40   : > { %s751_s29 = sshll.u32 (%p1239_p6), %s250_s28, 2  ;;  %s247_s9 = scalar_lea.vmem (%p1239_p6), [#allocation4], %s748_s26 }
  0x45   : > { %s1290_s2 = scalar_lea.vmem %s1450_s1, %s751_s29 }
  0x46   : > { %v269_v8 = vld [vmem:[%s1290_s2] sm:$0xf]  ;;  %v271_v9 = vld [vmem:[%s1290_s2 + $0x8] sm:$0xf]  ;;  %v273_v10 = vld [vmem:[%s1290_s2 + $0x10] sm:$0xf] }
  0x47   : > { %270 = vst [vmem:[%s247_s9] sm:$0xf] %v269_v8  ;;  %v275_v11 = vld [vmem:[%s1290_s2 + $0x18] sm:$0xf]  ;;  %v277_v12 = vld [vmem:[%s1290_s2 + $0x20] sm:$0xf] }
  0x48   : > { %272 = vst [vmem:[%s247_s9 + $0x4] sm:$0xf] %v271_v9  ;;  %v279_v13 = vld [vmem:[%s1290_s2 + $0x28] sm:$0xf]  ;;  %v281_v14 = vld [vmem:[%s1290_s2 + $0x30] sm:$0xf] }
  0x49   : > { %274 = vst [vmem:[%s247_s9 + $0x8] sm:$0xf] %v273_v10  ;;  %v283_v15 = vld [vmem:[%s1290_s2 + $0x38] sm:$0xf]  ;;  %v285_v16 = vld [vmem:[%s1290_s2 + $0x40] sm:$0xf] }
  0x4a   : > { %276 = vst [vmem:[%s247_s9 + $0xc] sm:$0xf] %v275_v11  ;;  %v287_v17 = vld [vmem:[%s1290_s2 + $0x48] sm:$0xf]  ;;  %v289_v18 = vld [vmem:[%s1290_s2 + $0x50] sm:$0xf] }
  0x4b   : > { %278 = vst [vmem:[%s247_s9 + $0x10] sm:$0xf] %v277_v12  ;;  %v291_v19 = vld [vmem:[%s1290_s2 + $0x58] sm:$0xf]  ;;  %v293_v20 = vld [vmem:[%s1290_s2 + $0x60] sm:$0xf] }
  0x4c   : > { %280 = vst [vmem:[%s247_s9 + $0x14] sm:$0xf] %v279_v13  ;;  %v295_v21 = vld [vmem:[%s1290_s2 + $0x68] sm:$0xf]  ;;  %v297_v22 = vld [vmem:[%s1290_s2 + $0x70] sm:$0xf] }
  0x4d   : > { %282 = vst [vmem:[%s247_s9 + $0x18] sm:$0xf] %v281_v14  ;;  %v299_v23 = vld [vmem:[%s1290_s2 + $0x78] sm:$0xf] }
  0x4e   : > { %284 = vst [vmem:[%s247_s9 + $0x1c] sm:$0xf] %v283_v15 }
  0x4f   : > { %286 = vst [vmem:[%s247_s9 + $0x20] sm:$0xf] %v285_v16 }
  0x50   : > { %288 = vst [vmem:[%s247_s9 + $0x24] sm:$0xf] %v287_v17 }
  0x51   : > { %290 = vst [vmem:[%s247_s9 + $0x28] sm:$0xf] %v289_v18 }
  0x52   : > { %292 = vst [vmem:[%s247_s9 + $0x2c] sm:$0xf] %v291_v19 }
  0x53   : > { %294 = vst [vmem:[%s247_s9 + $0x30] sm:$0xf] %v293_v20 }
  0x54   : > { %296 = vst [vmem:[%s247_s9 + $0x34] sm:$0xf] %v295_v21 }
  0x55   : > { %298 = vst [vmem:[%s247_s9 + $0x38] sm:$0xf] %v297_v22 }
  0x56   : > { %300 = vst [vmem:[%s247_s9 + $0x3c] sm:$0xf] %v299_v23 }
  0x57 PF: > { %p752_p4 = scmp.ge.s32.totalorder %s1117_s25, 1  ;;  %p361_p5 = scmp.lt.s32.totalorder %s1117_s25, 17 }
  0x59   : > { %p362_p6 = pnand %p752_p4, %p361_p5 }
  0x5a   : > { %s368_s8 = sand.u32 (!%p362_p6), 1, %s1085_s17   ;;  %s375_s11 = sand.u32 (!%p362_p6), 1, %s1077_s15  }
  0x5b   : > { %365 = sbr.rel (%p362_p6) target bundleno = 364 (0x16c), region = 106  ;;  %s753_s7 = sshll.u32 (!%p362_p6), %s368_s8, 5 }
  0x5c   : > { %s754_s3 = sshll.u32 (!%p362_p6), %s375_s11, 6  ;;  %s402_s26 = sand.u32 (!%p362_p6), 1, %s1069_s13  }
  0x5d   : > { %p407_p7 = scmp.lt.s32.totalorder (!%p362_p6), %s1097_s20, 3  ;;  %s755_s28 = sshll.u32 (!%p362_p6), %s402_s26, 6 }
  0x5e   : > { %s1451_s2 = sld [smem:[#allocation15_spill]] (!%p362_p6)  ;;  %s1323_s0 = scalar_lea.vmem (!%p362_p6), [#allocation3], %s753_s7 }
  0x5f   : > { %s1325_s1 = scalar_lea.vmem (!%p362_p6), [#allocation4], %s754_s3  ;;  %s1327_s30 = scalar_lea.vmem (!%p362_p6), [#allocation5], %s755_s28 }
  0x60   : > { %s1317_s29 = scalar_select %p407_p7, %s1097_s20, 3 }
  0x61   : > { %s1452_s15 = sld [smem:[#allocation8_spill]] }
  0x64   : > { %s409_s9 = scalar_lea.vmem %s1451_s2, %s1317_s29 }
  0x67   : > { %p756_p8 = scmp.ne.s32.totalorder %s1452_s15, 0 }
  0x69   : > { %414 = sbr.rel (%p756_p8) target bundleno = 119 (0x77), region = 118 }
  0x6e   : > { %v1119_v24 = vmov 0.0  }
  0x6f   : > { %415 = vst [vmem:[#allocation2 + $0x30] sm:$0xff] %v1119_v24 }
  0x70   : > { %416 = vst [vmem:[#allocation2] sm:$0xff] %v1119_v24 }
  0x71   : > { %417 = vst [vmem:[#allocation2 + $0x18] sm:$0xff] %v1119_v24 }
  0x72   : > { %418 = vst [vmem:[#allocation2 + $0x10] sm:$0xff] %v1119_v24 }
  0x73   : > { %419 = vst [vmem:[#allocation2 + $0x8] sm:$0xff] %v1119_v24 }
  0x74   : > { %420 = vst [vmem:[#allocation2 + $0x20] sm:$0xff] %v1119_v24 }
  0x75   : > { %421 = vst [vmem:[#allocation2 + $0x28] sm:$0xff] %v1119_v24 }
  0x76   : > { %422 = vst [vmem:[#allocation2 + $0x38] sm:$0xff] %v1119_v24 }
  0x77 PF: > { %v825_v25 = vld [vmem:[%s1325_s1 + $0x38] sm:$0xff]  ;;  %v824_v26 = vld [vmem:[%s1325_s1 + $0x30] sm:$0xff]  ;;  %v823_v27 = vld [vmem:[%s1325_s1 + $0x28] sm:$0xff] }
  0x78   : > { %527 = vmatpush.bf16.xpose.msra.mxu0 %v825_v25  ;;  %827 = vmatpush.bf16.xpose.msra.mxu1 %v825_v25  ;;  %v822_v28 = vld [vmem:[%s1325_s1 + $0x20] sm:$0xff]  ;;  %v821_v29 = vld [vmem:[%s1325_s1 + $0x18] sm:$0xff]  ;;  %v820_v30 = vld [vmem:[%s1325_s1 + $0x10] sm:$0xff] }
  0x79   : > { %828 = vmatpush.bf16.xpose.msra.mxu2 %v825_v25  ;;  %829 = vmatpush.bf16.xpose.msra.mxu3 %v825_v25  ;;  %v819_v31 = vld [vmem:[%s1325_s1 + $0x8] sm:$0xff]  ;;  %v818_v32 = vld [vmem:[%s1325_s1] sm:$0xff]  ;;  %v816_v35 = vld [vmem:[%s1323_s0 + $0x10] sm:$0xff] }
  0x7a   : > { %v814_v33 = vld [vmem:[%s1323_s0] sm:$0xff]  ;;  %v815_v34 = vld [vmem:[%s1323_s0 + $0x8] sm:$0xff]  ;;  %v817_v36 = vld [vmem:[%s1323_s0 + $0x18] sm:$0xff]  ;;  %s1453_s0 = sld [smem:[#allocation8_spill]] }
  0x7b   : > { %v423_v37 = vld [vmem:[#allocation2 + $0x30] sm:$0xff]  ;;  %v425_v38 = vld [vmem:[#allocation2 + $0x18] sm:$0xff]  ;;  %v427_v43 = vld [vmem:[#allocation2 + $0x8] sm:$0xff] }
  0x7c   : > { %v429_v44 = vld [vmem:[#allocation2 + $0x28] sm:$0xff]  ;;  %v424_v45 = vld [vmem:[#allocation2] sm:$0xff]  ;;  %v426_v46 = vld [vmem:[#allocation2 + $0x10] sm:$0xff] }
  0x7d   : > { %v428_v55 = vld [vmem:[#allocation2 + $0x20] sm:$0xff]  ;;  %v430_v56 = vld [vmem:[#allocation2 + $0x38] sm:$0xff] }
  0x80   : > { %528 = vmatpush.bf16.xpose.msra.mxu0 %v824_v26  ;;  %830 = vmatpush.bf16.xpose.msra.mxu1 %v824_v26  ;;  %p805_p9 = scmp.ne.s32.totalorder %s1453_s0, 1 }
  0x81   : > { %831 = vmatpush.bf16.xpose.msra.mxu2 %v824_v26  ;;  %832 = vmatpush.bf16.xpose.msra.mxu3 %v824_v26 }
  0x88   : > { %529 = vmatpush.bf16.xpose.msra.mxu0 %v823_v27  ;;  %833 = vmatpush.bf16.xpose.msra.mxu1 %v823_v27 }
  0x89   : > { %834 = vmatpush.bf16.xpose.msra.mxu2 %v823_v27  ;;  %835 = vmatpush.bf16.xpose.msra.mxu3 %v823_v27 }
  0x90   : > { %530 = vmatpush.bf16.xpose.msra.mxu0 %v822_v28  ;;  %836 = vmatpush.bf16.xpose.msra.mxu1 %v822_v28 }
  0x91   : > { %837 = vmatpush.bf16.xpose.msra.mxu2 %v822_v28  ;;  %838 = vmatpush.bf16.xpose.msra.mxu3 %v822_v28 }
  0x98   : > { %531 = vmatpush.bf16.xpose.msra.mxu0 %v821_v29  ;;  %839 = vmatpush.bf16.xpose.msra.mxu1 %v821_v29 }
  0x99   : > { %840 = vmatpush.bf16.xpose.msra.mxu2 %v821_v29  ;;  %841 = vmatpush.bf16.xpose.msra.mxu3 %v821_v29 }
  0xa0   : > { %532 = vmatpush.bf16.xpose.msra.mxu0 %v820_v30  ;;  %842 = vmatpush.bf16.xpose.msra.mxu1 %v820_v30 }
  0xa1   : > { %843 = vmatpush.bf16.xpose.msra.mxu2 %v820_v30  ;;  %844 = vmatpush.bf16.xpose.msra.mxu3 %v820_v30 }
  0xa8   : > { %533 = vmatpush.bf16.xpose.msra.mxu0 %v819_v31  ;;  %845 = vmatpush.bf16.xpose.msra.mxu1 %v819_v31 }
  0xa9   : > { %846 = vmatpush.bf16.xpose.msra.mxu2 %v819_v31  ;;  %847 = vmatpush.bf16.xpose.msra.mxu3 %v819_v31 }
  0xb0   : > { %534 = vmatpush.bf16.xpose.msra.mxu0 %v818_v32  ;;  %848 = vmatpush.bf16.xpose.msra.mxu1 %v818_v32 }
  0xb1   : > { %849 = vmatpush.bf16.xpose.msra.mxu2 %v818_v32  ;;  %850 = vmatpush.bf16.xpose.msra.mxu3 %v818_v32 }
  0xb7   : > { %535 = vmatmul.bf16.vlgmr.msra.gmra.mxu0 %v814_v33  ;;  %540 = vmatmul.bf16.vlgmr.msra.gmra.mxu1 %v815_v34 }
  0xb8   : > { %545 = vmatmul.bf16.vlgmr.msra.gmra.mxu2 %v816_v35  ;;  %550 = vmatmul.bf16.vlgmr.msra.gmra.mxu3 %v817_v36 }
 0x134   : > { %v536_v39 = vpop.f32.mrf.mxu0  ;;  %v541_v40 = vpop.f32.mrf.mxu1 }
 0x135   : > { %v556_v41 = vadd.f32 %v536_v39, %v423_v37  ;;  %v558_v42 = vadd.f32 %v541_v40, %v425_v38 }
 0x137   : > { %564 = vst [vmem:[#allocation2 + $0x30] sm:$0xff] %v556_v41 }
 0x138   : > { %566 = vst [vmem:[#allocation2 + $0x18] sm:$0xff] %v558_v42 }
 0x13b   : > { %v546_v47 = vpop.f32.mrf.mxu2  ;;  %v551_v48 = vpop.f32.mrf.mxu3 }
 0x13c   : > { %v560_v49 = vadd.f32 %v546_v47, %v427_v43  ;;  %v562_v50 = vadd.f32 %v551_v48, %v429_v44  ;;  %v538_v51 = vpop.f32.mrf.mxu0  ;;  %v543_v52 = vpop.f32.mrf.mxu1 }
 0x13d   : > { %v557_v53 = vadd.f32 %v538_v51, %v424_v45  ;;  %v559_v54 = vadd.f32 %v543_v52, %v426_v46 }
 0x13e   : > { %568 = vst [vmem:[#allocation2 + $0x8] sm:$0xff] %v560_v49 }
 0x13f   : > { %570 = vst [vmem:[#allocation2 + $0x28] sm:$0xff] %v562_v50 }
 0x140   : > { %565 = vst [vmem:[#allocation2] sm:$0xff] %v557_v53 }
 0x141   : > { %567 = vst [vmem:[#allocation2 + $0x10] sm:$0xff] %v559_v54 }
 0x143   : > { %v548_v57 = vpop.f32.mrf.mxu2  ;;  %v553_v58 = vpop.f32.mrf.mxu3  ;;  %575 = sbr.rel (%p805_p9) target bundleno = 339 (0x153), region = 122 }
 0x144   : > { %v561_v59 = vadd.f32 %v548_v57, %v428_v55  ;;  %v563_v60 = vadd.f32 %v553_v58, %v430_v56 }
 0x146   : > { %569 = vst [vmem:[#allocation2 + $0x20] sm:$0xff] %v561_v59 }
 0x147   : > { %571 = vst [vmem:[#allocation2 + $0x38] sm:$0xff] %v563_v60 }
 0x148   : > { %v576_v61 = vld [vmem:[#allocation2 + $0x30] sm:$0xff]  ;;  %v974_v62 = vld [vmem:[%s409_s9] ss:$0 sm:$0xff]  ;;  %v578_v0 = vld [vmem:[#allocation2 + $0x18] sm:$0xff] }
 0x149   : > { %v577_v63 = vld [vmem:[#allocation2] sm:$0xff]  ;;  %v579_v1 = vld [vmem:[#allocation2 + $0x10] sm:$0xff]  ;;  %v588_v2 = vadd.f32 %v974_v62, %v576_v61  ;;  %v590_v4 = vadd.f32 %v974_v62, %v578_v0  ;;  %v580_v5 = vld [vmem:[#allocation2 + $0x8] sm:$0xff] }
 0x14a   : > { %v589_v3 = vadd.f32 %v974_v62, %v577_v63  ;;  %v591_v7 = vadd.f32 %v974_v62, %v579_v1  ;;  %v582_v8 = vld [vmem:[#allocation2 + $0x28] sm:$0xff]  ;;  %v592_v9 = vadd.f32 %v974_v62, %v580_v5 }
 0x14b   : > { %596 = vst [vmem:[%s1327_s30] sm:$0xff] %v588_v2  ;;  %v594_v12 = vadd.f32 %v974_v62, %v582_v8 }
 0x14c   : > { %597 = vst [vmem:[%s1327_s30 + $0x8] sm:$0xff] %v589_v3 }
 0x14d   : > { %v581_v6 = vld [vmem:[#allocation2 + $0x20] sm:$0xff]  ;;  %598 = vst [vmem:[%s1327_s30 + $0x10] sm:$0xff] %v590_v4 }
 0x14e   : > { %v583_v10 = vld [vmem:[#allocation2 + $0x38] sm:$0xff]  ;;  %v593_v11 = vadd.f32 %v974_v62, %v581_v6  ;;  %599 = vst [vmem:[%s1327_s30 + $0x18] sm:$0xff] %v591_v7 }
 0x14f   : > { %v595_v13 = vadd.f32 %v974_v62, %v583_v10  ;;  %600 = vst [vmem:[%s1327_s30 + $0x20] sm:$0xff] %v592_v9 }
 0x150   : > { %601 = vst [vmem:[%s1327_s30 + $0x28] sm:$0xff] %v593_v11 }
 0x151   : > { %602 = vst [vmem:[%s1327_s30 + $0x30] sm:$0xff] %v594_v12 }
 0x152   : > { %603 = vst [vmem:[%s1327_s30 + $0x38] sm:$0xff] %v595_v13 }
 0x153 PF: > { %s1455_s11 = sld [smem:[#allocation9_spill]]  ;;  %s619_s28 = sshll.u32 %s1327_s30, 4  ;;  %s620_s28 = int_to_ptr.vmem [resolvable:$true] %s619_s28 }
 0x154   : > { %s1456_s2 = sld [smem:[#allocation16_spill]]  ;;  %s605_s0 = scalar_lea.sflag [#allocation6], %s402_s26 }
 0x159   : > { %s826_s7 = sshll.u32 %s1455_s11, 5 }
 0x15a   : > { %s616_s3 = sadd.s32 %s1097_s20, %s826_s7  ;;  %s995_s30 = scalar_lea.hbm %s1456_s2, 512 }
 0x15b   : > { %s809_s29 = sshll.u32 %s616_s3, 3 }
 0x15c   : > { %s618_s9 = scalar_lea.hbm %s1456_s2, %s809_s29 }
 0x15d   : > { %s621_s15 = sshll.u32 %s618_s9, 4  ;;  %s622_s15 = int_to_ptr.hbm [resolvable:$true] %s621_s15 }
 0x15e   : > { %s989_s1 = sshra.s32 %s622_s15, 4  ;;  %s990_s1 = int_to_ptr.hbm [resolvable:$true] %s989_s1 }
 0x15f   : > { %s991_s17 = scalar_lea.hbm %s990_s1, 64  ;;  %p996_p13 = scmp.lt.s32.totalorder %s990_s1, %s1456_s2 }
 0x160   : > { %p992_p10 = scmp.ne.s32.totalorder %s990_s1, %s991_s17  ;;  %p997_p1 = scmp.lt.s32.totalorder %s995_s30, %s991_s17 }
 0x162   : > { %p993_p11 = pnand %p992_p10, %p1263_p0  ;;  %p998_p3 = por %p997_p1, %p996_p13 }
 0x164   : > { %p994_p12 = pneg %p993_p11 }
 0x166   : > { %p999_p4 = pnand %p998_p3, %p994_p12 }
 0x168   : > { %1002 = shalt.err (!%p999_p4)
}
 0x169   : > { %s1120_s26 = smov 128   ;;  %s1121_s3 = smov 512  }
 0x16a   : > { %s1122_s29 = smov 8  }
 0x16b   : > { %851 = dma.vmem_to_hbm [thread:$0]  (%p1263_p0), %s620_s28, 1024, %s622_s15, %s605_s0, %s1120_s26, %s1121_s3, %s1122_s29  }
 0x16c PF: > { %p857_p5 = scmp.ge.s32.totalorder %s1117_s25, 2  ;;  %s636_s4 = sand.u32 1, %s1065_s12  }
 0x16d   : > { %s637_s5 = scalar_lea.sflag [#allocation6], %s636_s4 }
 0x16e   : > { %p854_p6 = pnand %p857_p5, %p1269_p2 }
 0x170   : > { %p855_p7 = pneg %p854_p6 }
 0x172   : > { %1060 = dma.done.wait (%p855_p7), %s637_s5, 1024  }
 0x173   : > { %1062 = vsyncadd (%p855_p7), %s637_s5, 4294966272  ;;  %s16_s25 = sadd.s32 1, %s1117_s25   ;;  %s1458_s10 = sld [smem:[#allocation10_spill]] }
 0x174   : > { %p1379_p8 = scmp.ge.s32.totalorder %s16_s25, 18   ;;  %s1459_s6 = sld [smem:[#allocation11_spill]] }
 0x175   : > { %s1460_s28 = sld [smem:[#allocation12_spill]]  ;;  %s1461_s12 = smov %s1069_s13 }
 0x176   : > { %s1462_s13 = smov %s1073_s14  ;;  %s1463_s14 = smov %s1261_s19 }
 0x177   : > { %s1464_s15 = smov %s1081_s16  ;;  %s1465_s16 = smov %s1247_s27 }
 0x178   : > { %s1466_s17 = smov %s1089_s18  ;;  %s1467_s18 = smov %s1258_s21 }
 0x179   : > { %s1468_s19 = smov %s1105_s22  ;;  %s1469_s20 = smov %s1109_s23 }
 0x17a   : > { %s1470_s21 = smov %s1113_s24  ;;  %s1471_s22 = smov %s1458_s10 }
 0x17b   : > { %s1472_s23 = smov %s1459_s6  ;;  %s1473_s24 = smov %s1460_s28 }
 0x17c   :  { %15 = sbr.rel (!%p1379_p8) target bundleno = 13 (0xd), region = 173 }
 0x181   :  { %643 = vsyncpa [#allocation6], 1 }
 0x182   :  { %645 = vsyncpa [#allocation6 + $0x1], 1 }

</bundles_post_ra>
